<compile_context>
chip_gen: v6e
topology: v6e:2x2x1
jax: 0.10.0
libtpu: 0.0.40
codegen_flags: <defaults>
</compile_context>

<pallas_src>
import functools

import jax
import jax.numpy as jnp
from jax.experimental import pallas as pl
from jax.experimental.pallas import tpu as pltpu


_NEG_INF = -1e30  # large-negative instead of -inf: exp underflows to exactly 0, no NaN risk.
_VMEM_LIMIT = 48 * 1024 * 1024  # conservative for v7x (64 MiB physical VMEM per TensorCore)


# ----------------------------- tiling helper -------------------------------

def _pick_tile(size, target, align=8):
    """Largest tile <= target that divides `size` and is a multiple of `align`.

    Falls back to the full dimension only if no aligned divisor exists (always legal)."""
    t = min(size, target)
    if t == size:
        return t
    best = None
    for d in range(align, t + 1, align):
        if size % d == 0:
            best = d
    # TODO(synk): pad + mask ragged tails instead of falling back to a full-size block.
    return best if best is not None else size


# ----------------------------- tiled matmul --------------------------------

def _matmul_kernel(a_ref, b_ref, o_ref, acc_ref):
    @pl.when(pl.program_id(2) == 0)
    def _():
        acc_ref[...] = jnp.zeros_like(acc_ref)

    acc_ref[...] += jnp.dot(a_ref[...], b_ref[...], preferred_element_type=jnp.float32)

    @pl.when(pl.program_id(2) == pl.num_programs(2) - 1)
    def _():
        o_ref[...] = acc_ref[...].astype(o_ref.dtype)


def pallas_matmul(a, b, *, tm=512, tn=512, tk=512):
    """a: (M, K), b: (K, N) -> (M, N), tiled with an f32 VMEM accumulator."""
    M, K = a.shape
    K2, N = b.shape
    assert K == K2
    tm = _pick_tile(M, tm, 8)
    tn = _pick_tile(N, tn, 128)
    tk = _pick_tile(K, tk, 128)
    grid = (M // tm, N // tn, K // tk)
    return pl.pallas_call(
        _matmul_kernel,
        out_shape=jax.ShapeDtypeStruct((M, N), a.dtype),
        grid=grid,
        in_specs=[
            pl.BlockSpec((tm, tk), lambda i, j, k: (i, k)),
            pl.BlockSpec((tk, tn), lambda i, j, k: (k, j)),
        ],
        out_specs=pl.BlockSpec((tm, tn), lambda i, j, k: (i, j)),
        scratch_shapes=[pltpu.VMEM((tm, tn), jnp.float32)],
        compiler_params=pltpu.CompilerParams(
            dimension_semantics=("parallel", "parallel", "arbitrary"),
            vmem_limit_bytes=_VMEM_LIMIT,
        ),
    )(a, b)


# --------------------- one-shot RoPE over the fused QKV slab ----------------

def _rope_kernel(x_ref, cos_ref, sin_ref, o_ref, *, rot_heads):
    """x_ref: (bs, D) head block.  Heads < rot_heads (Q and K) are rotated, rest (V) copied.

    The QKV weights for Q/K were pre-permuted so each head's columns are [evens | odds];
    complex RoPE then becomes the plain half-split rotation below."""
    h = pl.program_id(2)
    half = x_ref.shape[-1] // 2

    @pl.when(h < rot_heads)
    def _rotate():
        x = x_ref[...].astype(jnp.float32)
        xe = x[:, :half]
        xo = x[:, half:]
        c = cos_ref[...]
        s = sin_ref[...]
        o_ref[...] = jnp.concatenate([xe * c - xo * s, xe * s + xo * c],
                                     axis=-1).astype(o_ref.dtype)

    @pl.when(h >= rot_heads)
    def _copy():
        o_ref[...] = x_ref[...]


def pallas_rope(qkv, cos_half, sin_half, *, n_heads, n_kv_heads, head_dim, block_s=512):
    """qkv: (B, S, (n_heads + 2*n_kv_heads) * D).  Rotates Q and K columns once; V passes through."""
    B, S, W = qkv.shape
    D = head_dim
    total_heads = n_heads + 2 * n_kv_heads
    rot_heads = n_heads + n_kv_heads
    assert W == total_heads * D
    bs = _pick_tile(S, block_s, 8)
    grid = (B, S // bs, total_heads)   # heads innermost: cos/sin blocks stay resident across heads

    kernel = functools.partial(_rope_kernel, rot_heads=rot_heads)
    return pl.pallas_call(
        kernel,
        out_shape=jax.ShapeDtypeStruct((B, S, W), qkv.dtype),
        grid=grid,
        in_specs=[
            pl.BlockSpec((None, bs, D), lambda b, si, h: (b, si, h)),
            pl.BlockSpec((bs, D // 2), lambda b, si, h: (si, 0)),
            pl.BlockSpec((bs, D // 2), lambda b, si, h: (si, 0)),
        ],
        out_specs=pl.BlockSpec((None, bs, D), lambda b, si, h: (b, si, h)),
        compiler_params=pltpu.CompilerParams(
            dimension_semantics=("parallel", "parallel", "arbitrary"),
            vmem_limit_bytes=_VMEM_LIMIT,
        ),
    )(qkv, cos_half, sin_half)


# ----------------------- GQA-grouped flash attention ------------------------

def _flash_attn_kernel(q_ref, k_ref, v_ref, o_ref, m_sc, l_sc, acc_sc, *,
                       scale, block_q, block_k, repeats, head_dim):
    qi = pl.program_id(2)
    ki = pl.program_id(3)
    D = head_dim

    @pl.when(ki == 0)
    def _init():
        m_sc[...] = jnp.full_like(m_sc, _NEG_INF)
        l_sc[...] = jnp.zeros_like(l_sc)
        acc_sc[...] = jnp.zeros_like(acc_sc)

    def _attend(masked):
        k = k_ref[...]                     # (bk, D) — fetched once, shared by all heads of group
        v = v_ref[...]                     # (bk, D)
        if masked:
            q_pos = qi * block_q + jax.lax.broadcasted_iota(jnp.int32, (block_q, block_k), 0)
            k_pos = ki * block_k + jax.lax.broadcasted_iota(jnp.int32, (block_q, block_k), 1)
            keep = k_pos <= q_pos
        for hd in range(repeats):          # static loop: per-head QK^T / PV issued back-to-back
            q = q_ref[:, hd * D:(hd + 1) * D]
            s = jax.lax.dot_general(q, k, (((1,), (1,)), ((), ())),
                                    preferred_element_type=jnp.float32) * scale
            if masked:
                s = jnp.where(keep, s, _NEG_INF)
            m_prev = m_sc[:, hd:hd + 1]
            l_prev = l_sc[:, hd:hd + 1]
            m_new = jnp.maximum(m_prev, jnp.max(s, axis=-1, keepdims=True))
            alpha = jnp.exp(m_prev - m_new)
            p = jnp.exp(s - m_new)
            l_sc[:, hd:hd + 1] = alpha * l_prev + jnp.sum(p, axis=-1, keepdims=True)
            acc_sc[:, hd * D:(hd + 1) * D] = alpha * acc_sc[:, hd * D:(hd + 1) * D] + jnp.dot(
                p.astype(v.dtype), v, preferred_element_type=jnp.float32)
            m_sc[:, hd:hd + 1] = m_new

    # Fully-below-diagonal tiles: no mask needed (pure VALU saving on interior tiles).
    @pl.when((ki + 1) * block_k - 1 <= qi * block_q)
    def _():
        _attend(masked=False)

    # Diagonal-crossing tiles: in-kernel causal mask via broadcasted_iota (no (S,S) mask in HBM).
    @pl.when(jnp.logical_and(ki * block_k <= qi * block_q + (block_q - 1),
                             (ki + 1) * block_k - 1 > qi * block_q))
    def _():
        _attend(masked=True)

    # Tiles entirely above the diagonal fall through (their K/V DMA is clamped away in index_map).

    @pl.when(ki == pl.num_programs(3) - 1)
    def _finalize():
        inv_l = 1.0 / l_sc[...]            # (bq, repeats); exact softmax normalization
        for hd in range(repeats):
            o_ref[:, hd * D:(hd + 1) * D] = (
                acc_sc[:, hd * D:(hd + 1) * D] * inv_l[:, hd:hd + 1]).astype(o_ref.dtype)


def pallas_flash_attention(qkv, *, n_heads, n_kv_heads, head_dim, scale,
                           block_q=512, block_k=512):
    """qkv: (B, S, (n_heads + 2*n_kv_heads) * D) pre-rotated slab.  Causal prefill attention.

    Returns (B, S, n_heads*D) in the native layout (no transposes).  Q/K/V tiles are selected
    from the same slab purely via BlockSpec index_maps; K/V are fetched once per KV-head group."""
    B, S, W = qkv.shape
    D = head_dim
    repeats = n_heads // n_kv_heads
    assert W == (n_heads + 2 * n_kv_heads) * D
    bq = _pick_tile(S, block_q, 8)
    bk = _pick_tile(S, block_k, 8)
    grid = (B, n_kv_heads, S // bq, S // bk)

    def q_map(b, kh, qi, ki):
        return (b, qi, kh)                          # block units of repeats*D -> q-heads of group kh

    def kv_map(col_block_offset):
        def _map(b, kh, qi, ki):
            # Clamp above-diagonal kv blocks to the last causally-needed block: repeated block
            # index => the pipeline issues no new DMA for skipped tiles.
            last_ki = (qi * bq + bq - 1) // bk
            return (b, jnp.minimum(ki, last_ki), col_block_offset + kh)   # block units of D
        return _map

    kernel = functools.partial(_flash_attn_kernel, scale=scale, block_q=bq, block_k=bk,
                               repeats=repeats, head_dim=D)
    return pl.pallas_call(
        kernel,
        out_shape=jax.ShapeDtypeStruct((B, S, n_heads * D), qkv.dtype),
        grid=grid,
        in_specs=[
            pl.BlockSpec((None, bq, repeats * D), q_map),                 # Q columns of the slab
            pl.BlockSpec((None, bk, D), kv_map(n_heads)),                 # K columns (GQA shared)
            pl.BlockSpec((None, bk, D), kv_map(n_heads + n_kv_heads)),    # V columns (GQA shared)
        ],
        out_specs=pl.BlockSpec((None, bq, repeats * D), q_map),
        scratch_shapes=[
            pltpu.VMEM((bq, repeats), jnp.float32),       # running max m (per head column)
            pltpu.VMEM((bq, repeats), jnp.float32),       # running denom l
            pltpu.VMEM((bq, repeats * D), jnp.float32),   # output accumulator
        ],
        compiler_params=pltpu.CompilerParams(
            dimension_semantics=("parallel", "parallel", "parallel", "arbitrary"),
            vmem_limit_bytes=_VMEM_LIMIT,
        ),
    )(qkv, qkv, qkv)


# ------------------------------ weight / RoPE prep --------------------------

def precompute_freqs(head_dim, seqlen, theta=10000.0):
    """cos/sin of shape (seqlen, head_dim // 2) — real/imag of freqs_cis."""
    inv = 1.0 / (theta ** (jnp.arange(0, head_dim, 2, dtype=jnp.float32) / head_dim))
    t = jnp.arange(seqlen, dtype=jnp.float32)
    freqs = jnp.outer(t, inv)
    return jnp.cos(freqs), jnp.sin(freqs)


def permute_rope_weight(w, n_heads, head_dim):
    """Reorder each head's output columns from interleaved (e0,o0,e1,o1,...) to [evens|odds].

    Q and K get the same permutation, so q.k^T is unchanged; RoPE becomes a half-split rotation."""
    dim = w.shape[0]
    w = w.reshape(dim, n_heads, head_dim // 2, 2)
    w = jnp.concatenate([w[..., 0], w[..., 1]], axis=-1)
    return w.reshape(dim, n_heads * head_dim)


def fuse_qkv_weights(wq, wk, wv, n_heads, n_kv_heads, head_dim):
    """One-time prep: permute wq/wk for half-split RoPE and concat into a single (dim, Nq+2Nkv)."""
    wq_p = permute_rope_weight(wq, n_heads, head_dim)
    wk_p = permute_rope_weight(wk, n_kv_heads, head_dim)
    return jnp.concatenate([wq_p, wk_p, wv], axis=1)


# ------------------------------ forward pass --------------------------------

def attention_forward(x, w_qkv, wo, cos_half, sin_half, n_heads, n_kv_heads, head_dim,
                      block_q=512, block_k=512):
    B, S, dim = x.shape
    D = head_dim
    scale = D ** (-0.5)
    total_w = (n_heads + 2 * n_kv_heads) * D

    # Fused QKV projection: one lane-dense tiled matmul, x read from HBM once.
    qkv = pallas_matmul(x.reshape(B * S, dim), w_qkv).reshape(B, S, total_w)

    # RoPE applied exactly once (Q and K columns; V copied through) — nothing left in the
    # attention inner loop, no cos/sin streamed per kv step.
    qkv = pallas_rope(qkv, cos_half, sin_half,
                      n_heads=n_heads, n_kv_heads=n_kv_heads, head_dim=D)

    # TODO(synk): KV-cache scatter_ omitted — in the prefill branch (positions.shape[0] > 1)
    # the cache is written but never read, so the returned value is unaffected.

    # Flash attention with GQA KV-tile sharing, causal DMA clamping, in-kernel causal mask.
    out = pallas_flash_attention(qkv, n_heads=n_heads, n_kv_heads=n_kv_heads, head_dim=D,
                                 scale=scale, block_q=block_q, block_k=block_k)  # (B, S, H*D)

    return pallas_matmul(out.reshape(B * S, n_heads * D), wo).reshape(B, S, dim)


# ------------------------- pure-JAX reference (spec) -------------------------

def apply_rotary_emb_interleaved(x, cos, sin):
    """x: (B, S, H, D). Complex multiply on interleaved (even, odd) pairs — mirrors PyTorch."""
    B, S, H, D = x.shape
    xr = x.astype(jnp.float32).reshape(B, S, H, D // 2, 2)
    xe, xo = xr[..., 0], xr[..., 1]
    c = cos[None, :, None, :]
    s = sin[None, :, None, :]
    oe = xe * c - xo * s
    oo = xe * s + xo * c
    return jnp.stack([oe, oo], axis=-1).reshape(B, S, H, D).astype(x.dtype)


def reference_forward(x, wq, wk, wv, wo, cos_half, sin_half, mask,
                      n_heads, n_kv_heads, head_dim):
    """Pure-JAX reference mirroring the PyTorch forward (prefill path)."""
    bsz, seqlen, dim = x.shape
    repeats = n_heads // n_kv_heads
    scale = head_dim ** (-0.5)
    xq = (x.reshape(-1, dim) @ wq).reshape(bsz, seqlen, n_heads, head_dim)
    xk = (x.reshape(-1, dim) @ wk).reshape(bsz, seqlen, n_kv_heads, head_dim)
    xv = (x.reshape(-1, dim) @ wv).reshape(bsz, seqlen, n_kv_heads, head_dim)
    xq = apply_rotary_emb_interleaved(xq, cos_half, sin_half)
    xk = apply_rotary_emb_interleaved(xk, cos_half, sin_half)
    key = jnp.repeat(xk, repeats, axis=2)
    val = jnp.repeat(xv, repeats, axis=2)
    q = jnp.transpose(xq, (0, 2, 1, 3))
    k = jnp.transpose(key, (0, 2, 1, 3))
    v = jnp.transpose(val, (0, 2, 1, 3))
    scores = jnp.einsum("bhqd,bhkd->bhqk", q, k) * scale + mask[None, None]
    probs = jax.nn.softmax(scores.astype(jnp.float32), axis=-1).astype(q.dtype)
    out = jnp.einsum("bhqk,bhkd->bhqd", probs, v)
    out = jnp.transpose(out, (0, 2, 1, 3)).reshape(bsz * seqlen, n_heads * head_dim)
    return (out @ wo).reshape(bsz, seqlen, dim)


# --------------------------------- main --------------------------------------

if __name__ == "__main__":
    # Small config (head_dim=128 matches the real module and keeps blocks lane-dense).
    # S=64 with 32-wide attention blocks exercises the multi-tile causal paths
    # (masked diagonal tile, unmasked interior tile, clamped skipped tile) and GQA sharing.
    bsz, seqlen = 2, 64
    dim, n_heads, n_kv_heads, head_dim = 64, 4, 2, 128

    key = jax.random.PRNGKey(0)
    kx, kq, kk, kv, ko = jax.random.split(key, 5)

    x = jax.random.normal(kx, (bsz, seqlen, dim), dtype=jnp.float32)
    # nn.Linear weights are (out, in); stored pre-transposed as (in, out).
    wq = jax.random.normal(kq, (dim, n_heads * head_dim), dtype=jnp.float32) * 0.05
    wk = jax.random.normal(kk, (dim, n_kv_heads * head_dim), dtype=jnp.float32) * 0.05
    wv = jax.random.normal(kv, (dim, n_kv_heads * head_dim), dtype=jnp.float32) * 0.05
    wo = jax.random.normal(ko, (n_heads * head_dim, dim), dtype=jnp.float32) * 0.05

    cos_half, sin_half = precompute_freqs(head_dim, seqlen)
    w_qkv = fuse_qkv_weights(wq, wk, wv, n_heads, n_kv_heads, head_dim)

    out = attention_forward(x, w_qkv, wo, cos_half, sin_half,
                            n_heads, n_kv_heads, head_dim,
                            block_q=32, block_k=32)
    out = jax.block_until_ready(out)

    # Reference uses the explicit causal mask built by the surrounding Transformer for prefill.
    idx = jnp.arange(seqlen)
    mask = jnp.where(idx[None, :] <= idx[:, None], 0.0, -jnp.inf).astype(jnp.float32)
    ref = reference_forward(x, wq, wk, wv, wo, cos_half, sin_half, mask,
                            n_heads, n_kv_heads, head_dim)

    assert out.shape == (bsz, seqlen, dim)
    assert bool(jnp.all(jnp.isfinite(out)))
    max_err = float(jnp.max(jnp.abs(out - ref)))
    assert bool(jnp.allclose(out, ref, rtol=1e-2, atol=1e-2)), max_err

    print("KERNEL_OK")
</pallas_src>

<mosaic_0001>
module attributes {stable_mosaic.version = 11 : i64} {
  func.func @_matmul_kernel(%arg0: i32, %arg1: i32, %arg2: i32, %arg3: memref<128x64xf32, #tpu.memory_space<vmem>>, %arg4: memref<64x512xf32, #tpu.memory_space<vmem>>, %arg5: memref<128x512xf32, #tpu.memory_space<vmem>>, %arg6: memref<128x512xf32, #tpu.memory_space<vmem>>) attributes {dimension_semantics = [#tpu.dimension_semantics<parallel>, #tpu.dimension_semantics<parallel>, #tpu.dimension_semantics<arbitrary>], iteration_bounds = array<i64: 1, 2, 1>, scalar_prefetch = 0 : i64, scratch_operands = 1 : i64, tpu.core_type = #tpu.core_type<tc>, window_params = [{transform_indices = @transform_0, window_bounds = array<i64: 128, 64>}, {transform_indices = @transform_1, window_bounds = array<i64: 64, 512>}, {transform_indices = @transform_2, window_bounds = array<i64: 128, 512>}]} {
    %c0_i32 = arith.constant 0 : i32
    %0 = arith.cmpi eq, %arg2, %c0_i32 : i32
    %1 = arith.extui %0 : i1 to i32
    %c0_i32_0 = arith.constant 0 : i32
    %2 = arith.cmpi ne, %1, %c0_i32_0 : i32
    scf.if %2 {
      %cst_10 = arith.constant 0.000000e+00 : f32
      %12 = vector.broadcast %cst_10 : f32 to vector<128x512xf32>
      %c0_11 = arith.constant 0 : index
      %c0_12 = arith.constant 0 : index
      %13 = vector.load %arg6[%c0_11, %c0_12] : memref<128x512xf32, #tpu.memory_space<vmem>>, vector<128x512xf32>
      tpu.vector_store %arg6[%c0_11, %c0_12], %12 {strides = array<i32>} : memref<128x512xf32, #tpu.memory_space<vmem>>, vector<128x512xf32>,
    } else {
    }
    %c0 = arith.constant 0 : index
    %c0_1 = arith.constant 0 : index
    %3 = vector.load %arg6[%c0, %c0_1] : memref<128x512xf32, #tpu.memory_space<vmem>>, vector<128x512xf32>
    %c0_2 = arith.constant 0 : index
    %c0_3 = arith.constant 0 : index
    %4 = vector.load %arg3[%c0_2, %c0_3] : memref<128x64xf32, #tpu.memory_space<vmem>>, vector<128x64xf32>
    %c0_4 = arith.constant 0 : index
    %c0_5 = arith.constant 0 : index
    %5 = vector.load %arg4[%c0_4, %c0_5] : memref<64x512xf32, #tpu.memory_space<vmem>>, vector<64x512xf32>
    %cst = arith.constant dense<0.000000e+00> : vector<128x512xf32>
    %6 = tpu.matmul %4, %5, %cst {dimension_numbers = #tpu.dot_dimension_numbers<[1], [0], [0], [1], [0, 0, 1, 1], [], []>} : vector<128x64xf32>, vector<64x512xf32>, vector<128x512xf32> -> vector<128x512xf32>
    %7 = arith.addf %3, %6 : vector<128x512xf32>
    %c0_6 = arith.constant 0 : index
    %c0_7 = arith.constant 0 : index
    %8 = vector.load %arg6[%c0_6, %c0_7] : memref<128x512xf32, #tpu.memory_space<vmem>>, vector<128x512xf32>
    tpu.vector_store %arg6[%c0_6, %c0_7], %7 {strides = array<i32>} : memref<128x512xf32, #tpu.memory_space<vmem>>, vector<128x512xf32>,
    %c0_i32_8 = arith.constant 0 : i32
    %9 = arith.cmpi eq, %arg2, %c0_i32_8 : i32
    %10 = arith.extui %9 : i1 to i32
    %c0_i32_9 = arith.constant 0 : i32
    %11 = arith.cmpi ne, %10, %c0_i32_9 : i32
    scf.if %11 {
      %c0_10 = arith.constant 0 : index
      %c0_11 = arith.constant 0 : index
      %12 = vector.load %arg6[%c0_10, %c0_11] : memref<128x512xf32, #tpu.memory_space<vmem>>, vector<128x512xf32>
      %c0_12 = arith.constant 0 : index
      %c0_13 = arith.constant 0 : index
      %13 = vector.load %arg5[%c0_12, %c0_13] : memref<128x512xf32, #tpu.memory_space<vmem>>, vector<128x512xf32>
      tpu.vector_store %arg5[%c0_12, %c0_13], %12 {strides = array<i32>} : memref<128x512xf32, #tpu.memory_space<vmem>>, vector<128x512xf32>,
    } else {
    }
    return
  }
  func.func @transform_0(%arg0: i32, %arg1: i32, %arg2: i32) -> (i32, i32) {
    %c0_i32 = arith.constant 0 : i32
    return %arg0, %arg2 : i32, i32
  }
  func.func @transform_1(%arg0: i32, %arg1: i32, %arg2: i32) -> (i32, i32) {
    %c0_i32 = arith.constant 0 : i32
    return %arg2, %arg1 : i32, i32
  }
  func.func @transform_2(%arg0: i32, %arg1: i32, %arg2: i32) -> (i32, i32) {
    %c0_i32 = arith.constant 0 : i32
    return %arg0, %arg1 : i32, i32
  }
}

</mosaic_0001>

<bundles_post_ra>
// kernel: tpu_custom_call.1
= control target key start
LH: loop header
LB: loop body
LE: loop exit
PB: predicated region body
PF: predicated region fallthrough
CT: control target
= control target key end

     0   :  { %7 = vsyncpa [#allocation4], 0  ;;  %s1771_s0 = inlined_call_operand.vmem [shape: f32[128,64], index: 0, kind: input, shape index: {}]   ;;  %s1772_s1 = inlined_call_operand.hbm [shape: f32[64,1024], index: 1, kind: input, shape index: {}]   ;;  %s1773_s2 = inlined_call_operand.hbm [shape: f32[128,1024], index: 2, kind: output, shape index: {}]  }
   0x1   :  { %9 = vsyncpa [#allocation4 + $0x1], 0 }
   0x2   :  { %10 = vsyncpa [#allocation5], 0 }
   0x3   :  { %12 = vsyncpa [#allocation5 + $0x1], 0  ;;  %s1413_s9 = smov 0   ;;  %s1415_s10 = smov 0  }
   0x4   :  { %s1417_s11 = smov 0   ;;  %s1419_s12 = smov 0  }
   0x5   :  { %s1421_s13 = smov 0   ;;  %s1423_s14 = smov 0  }
   0x6 LB: > { %s1160_s15 = sadd.s32 4294967295, %s1387_s14   ;;  %s1161_s16 = sadd.s32 4294967294, %s1387_s14   ;;  %s1387_s14 = sphi %s1423_s14, %s18_s14   ;;  %s1383_s13 = sphi %s1421_s13, %s1784_s13   ;;  %s1379_s12 = sphi %s1419_s12, %s1783_s12   ;;  %s1375_s11 = sphi %s1417_s11, %s1782_s11   ;;  %s1371_s10 = sphi %s1415_s10, %s1781_s10   ;;  %s1367_s9 = sphi %s1413_s9, %s1780_s9  }
   0x7   : > { %s33_s17 = sadd.s32 1, %s1383_s13  ;;  %s74_s18 = sadd.s32 1, %s1375_s11 }
   0x8   : > { %p35_p0 = scmp.ge.s32.totalorder %s33_s17, 2  ;;  %p81_p1 = scmp.ne.s32.totalorder %s1375_s11, %s1371_s10 }
   0x9   : > { %p82_p2 = scmp.eq.s32.totalorder %s1387_s14, 0  ;;  %p87_p3 = scmp.ne.s32.totalorder %s1371_s10, %s1367_s9 }
   0xa   : > { %s1786_s17 = smov (%p35_p0, %s33_s17), 0  ;;  %p88_p5 = scmp.eq.s32.totalorder %s1160_s15, 0 }
   0xb   : > { %p1454_p4 = por %p82_p2, %p81_p1  ;;  %s70_s20 = ssub.s32 %s1383_s13, %s1786_s17 }
   0xc   : > { %p113_p6 = scmp.eq.s32.totalorder %s1160_s15, 1  ;;  %p72_p7 = scmp.eq.s32.totalorder %s70_s20, 0 }
   0xd   : > { %p1460_p8 = por %p88_p5, %p87_p3  ;;  %p119_p10 = scmp.eq.s32.totalorder %s1161_s16, 1 }
   0xe   : > { %p1464_p9 = por %p113_p6, %p81_p1  ;;  %p1222_p13 = scmp.lt.s32.totalorder %s1387_s14, 2 }
   0xf   : > { %s1469_s23 = scalar_select %p72_p7, %s1375_s11, %s74_s18  }
  0x10   : > { %p1471_p11 = por %p119_p10, %p87_p3  ;;  %s151_s25 = sand.u32 1, %s1375_s11  }
  0x11   : > { %s1165_s26 = sshll.u32 %s151_s25, 8  ;;  %s1208_s27 = sshll.u32 %s1383_s13, 9 }
  0x12   : > { %s164_s30 = scalar_lea.hbm %s1772_s1, %s1208_s27  ;;  %s155_s3 = scalar_lea.vmem [#allocation3], %s1165_s26 }
  0x13   : > { %s165_s4 = sshll.u32 %s155_s3, 4  ;;  %p1484_p0 = pnand %p1222_p13, %p1454_p4  ;;  %s166_s4 = int_to_ptr.vmem [resolvable:$true] %s165_s4 }
  0x14   : > { %s152_s6 = scalar_lea.sflag [#allocation4], %s151_s25  ;;  %s1292_s7 = scalar_lea.vmem %s166_s4, 4096 }
  0x15   : > { %p1281_p1 = pneg %p1484_p0  ;;  %p1293_p2 = scmp.ne.s32.totalorder %s166_s4, %s1292_s7 }
  0x16   : > { %s1389_s8 = smov [#allocation3]  }
  0x17   : > { %p1295_p3 = pnand %p1293_p2, %p1281_p1  ;;  %s1297_s15 = sshll.u32 %s1389_s8, 4  ;;  %s1298_s15 = int_to_ptr.vmem [resolvable:$false] %s1297_s15 }
  0x18   : > { %s1299_s16 = scalar_lea.vmem %s1298_s15, 8192  ;;  %p1300_p6 = scmp.lt.s32.totalorder %s166_s4, %s1298_s15 }
  0x19   : > { %p1296_p5 = pneg %p1295_p3  ;;  %p1301_p7 = scmp.lt.s32.totalorder %s1299_s16, %s1292_s7 }
  0x1b   : > { %p1302_p10 = por %p1301_p7, %p1300_p6 }
  0x1d   : > { %p1303_p12 = pnand %p1302_p10, %p1296_p5 }
  0x1f   : > { %1306 = shalt.err (!%p1303_p12)
}
  0x20   : > { %s1390_s18 = smov 1024   ;;  %s1391_s19 = smov 512  }
  0x21   : > { %s1392_s20 = smov 32   ;;  %p1168_p4 = scmp.ge.s32.totalorder %s1387_s14, 1 }
  0x22   : > { %1217 = dma.hbm_to_vmem [thread:$0]  (!%p1484_p0), %s164_s30, 4096, %s166_s4, %s152_s6, %s1390_s18, %s1391_s19, %s1392_s20  }
  0x23   : > { %p173_p13 = scmp.lt.s32.totalorder %s1387_s14, 3 }
  0x25   : > { %p174_p1 = pnand %p1168_p4, %p173_p13 }
  0x26   : > { %s1495_s25 = sand.u32 (!%p174_p1), 1, %s1371_s10  }
  0x27   : > { %177 = sbr.rel (%p174_p1) target bundleno = 333 (0x14d), region = 28  ;;  %s1169_s26 = sshll.u32 (!%p174_p1), %s1495_s25, 8 }
  0x28   : > { %s180_s27 = scalar_lea.sflag (!%p174_p1), [#allocation4], %s1495_s25  ;;  %s1499_s28 = scalar_lea.vmem (!%p174_p1), [#allocation3], %s1169_s26 }
  0x2c   : > { %1358 = dma.done.wait (%p1460_p8), %s180_s27, 4096  }
  0x2d   : > { %1360 = vsyncadd (%p1460_p8), %s180_s27, 4294963200  ;;  %v1393_v0 = vmov 0.0   ;;  %v402_v1 = vld [vmem:[%s1499_s28 + $0xe8] sm:$0xff]  ;;  %v404_v2 = vld [vmem:[%s1499_s28 + $0xf8] sm:$0xff]  ;;  %vm405_vm0 = vcmask 523264   ;;  %s1170_s27 = sshll.u32 %s1495_s25, 9 }
  0x2e   : > { %518 = vmatprep.mubr.f32.mxu0 %v1393_v0  ;;  %679 = vmatprep.mubr.f32.mxu1 %v1393_v0  ;;  %v401_v3 = vld [vmem:[%s1499_s28 + $0xe0] sm:$0xff]  ;;  %v403_v4 = vld [vmem:[%s1499_s28 + $0xf0] sm:$0xff]  ;;  %v398_v5 = vld [vmem:[%s1499_s28 + $0xc8] sm:$0xff]  ;;  %s1209_s21 = sshll.u32 %s1379_s12, 9  ;;  %s1036_s12 = scalar_lea.sflag [#allocation5], %s1495_s25 }
  0x2f   : > { %470 = vmatprep.subr.mxu0 %v402_v1  ;;  %631 = vmatprep.subr.mxu1 %v404_v2  ;;  %v400_v6 = vld [vmem:[%s1499_s28 + $0xd8] sm:$0xff]  ;;  %v397_v7 = vld [vmem:[%s1499_s28 + $0xc0] sm:$0xff]  ;;  %v399_v8 = vld [vmem:[%s1499_s28 + $0xd0] sm:$0xff]  ;;  %s1717_s4 = scalar_lea.hbm %s1773_s2, %s1209_s21  ;;  %s1394_s6 = smov [#allocation6]  }
  0x30   : > { %471 = vmatpush1.msra.mxu0 %v401_v3  ;;  %632 = vmatpush1.msra.mxu1 %v403_v4  ;;  %v394_v9 = vld [vmem:[%s1499_s28 + $0xa8] sm:$0xff]  ;;  %v396_v10 = vld [vmem:[%s1499_s28 + $0xb8] sm:$0xff]  ;;  %v393_v11 = vld [vmem:[%s1499_s28 + $0xa0] sm:$0xff]  ;;  %s1311_s7 = sshll.u32 %s1394_s6, 4  ;;  %s1312_s7 = int_to_ptr.vmem [resolvable:$false] %s1311_s7 }
  0x31   : > { %472 = vmatprep.subr.mxu0 %v398_v5  ;;  %633 = vmatprep.subr.mxu1 %v400_v6  ;;  %v395_v12 = vld [vmem:[%s1499_s28 + $0xb0] sm:$0xff]  ;;  %v390_v13 = vld [vmem:[%s1499_s28 + $0x88] sm:$0xff]  ;;  %v392_v14 = vld [vmem:[%s1499_s28 + $0x98] sm:$0xff]  ;;  %s1313_s8 = scalar_lea.vmem %s1312_s7, 16384 }
  0x32   : > { %473 = vmatpush1.msra.mxu0 %v397_v7  ;;  %634 = vmatpush1.msra.mxu1 %v399_v8  ;;  %v389_v15 = vld [vmem:[%s1499_s28 + $0x80] sm:$0xff]  ;;  %v391_v16 = vld [vmem:[%s1499_s28 + $0x90] sm:$0xff]  ;;  %v386_v17 = vld [vmem:[%s1499_s28 + $0x68] sm:$0xff] }
  0x33   : > { %474 = vmatprep.subr.mxu0 %v394_v9  ;;  %635 = vmatprep.subr.mxu1 %v396_v10  ;;  %v388_v18 = vld [vmem:[%s1499_s28 + $0x78] sm:$0xff]  ;;  %v385_v19 = vld [vmem:[%s1499_s28 + $0x60] sm:$0xff]  ;;  %v387_v20 = vld [vmem:[%s1499_s28 + $0x70] sm:$0xff] }
  0x34   : > { %475 = vmatpush1.msra.mxu0 %v393_v11  ;;  %636 = vmatpush1.msra.mxu1 %v395_v12  ;;  %v382_v21 = vld [vmem:[%s1499_s28 + $0x48] sm:$0xff]  ;;  %v384_v22 = vld [vmem:[%s1499_s28 + $0x58] sm:$0xff]  ;;  %v381_v23 = vld [vmem:[%s1499_s28 + $0x40] sm:$0xff] }
  0x35   : > { %476 = vmatprep.subr.mxu0 %v390_v13  ;;  %637 = vmatprep.subr.mxu1 %v392_v14  ;;  %v383_v24 = vld [vmem:[%s1499_s28 + $0x50] sm:$0xff]  ;;  %v378_v25 = vld [vmem:[%s1499_s28 + $0x28] sm:$0xff]  ;;  %v380_v26 = vld [vmem:[%s1499_s28 + $0x38] sm:$0xff] }
  0x36   : > { %477 = vmatpush1.msra.mxu0 %v389_v15  ;;  %638 = vmatpush1.msra.mxu1 %v391_v16  ;;  %v377_v27 = vld [vmem:[%s1499_s28 + $0x20] sm:$0xff]  ;;  %v379_v28 = vld [vmem:[%s1499_s28 + $0x30] sm:$0xff]  ;;  %v374_v29 = vld [vmem:[%s1499_s28 + $0x8] sm:$0xff] }
  0x37   : > { %478 = vmatprep.subr.mxu0 %v386_v17  ;;  %639 = vmatprep.subr.mxu1 %v388_v18  ;;  %v376_v30 = vld [vmem:[%s1499_s28 + $0x18] sm:$0xff]  ;;  %v373_v31 = vld [vmem:[%s1499_s28] sm:$0xff]  ;;  %v375_v32 = vld [vmem:[%s1499_s28 + $0x10] sm:$0xff]  ;;  %s1650_s28 = scalar_lea.vmem [#allocation6], %s1170_s27 }
  0x38   : > { %479 = vmatpush1.msra.mxu0 %v385_v19  ;;  %640 = vmatpush1.msra.mxu1 %v387_v20  ;;  %v357_v33 = vld [vmem:[%s1771_s0] sm:$0xff]  ;;  %v358_v34 = vld [vmem:[%s1771_s0 + $0x8] sm:$0xff]  ;;  %v359_v35 = vld [vmem:[%s1771_s0 + $0x10] sm:$0xff]  ;;  %s1052_s29 = sshll.u32 %s1650_s28, 4  ;;  %s1719_s29 = int_to_ptr.vmem [resolvable:$true] %s1052_s29 }
  0x39   : > { %480 = vmatprep.subr.mxu0 %v382_v21  ;;  %641 = vmatprep.subr.mxu1 %v384_v22  ;;  %v360_v36 = vld [vmem:[%s1771_s0 + $0x18] sm:$0xff]  ;;  %v361_v37 = vld [vmem:[%s1771_s0 + $0x20] sm:$0xff]  ;;  %v362_v38 = vld [vmem:[%s1771_s0 + $0x28] sm:$0xff]  ;;  %s1307_s5 = scalar_lea.vmem %s1719_s29, 8192  ;;  %p1314_p2 = scmp.lt.s32.totalorder %s1719_s29, %s1312_s7 }
  0x3a   : > { %481 = vmatpush1.msra.mxu0 %v381_v23  ;;  %642 = vmatpush1.msra.mxu1 %v383_v24  ;;  %v363_v39 = vld [vmem:[%s1771_s0 + $0x30] sm:$0xff]  ;;  %v364_v40 = vld [vmem:[%s1771_s0 + $0x38] sm:$0xff]  ;;  %v365_v41 = vld [vmem:[%s1771_s0 + $0x40] sm:$0xff]  ;;  %p1308_p8 = scmp.ne.s32.totalorder %s1719_s29, %s1307_s5  ;;  %p1315_p3 = scmp.lt.s32.totalorder %s1313_s8, %s1307_s5 }
  0x3b   : > { %482 = vmatprep.subr.mxu0 %v378_v25  ;;  %643 = vmatprep.subr.mxu1 %v380_v26  ;;  %v366_v42 = vld [vmem:[%s1771_s0 + $0x48] sm:$0xff]  ;;  %v367_v43 = vld [vmem:[%s1771_s0 + $0x50] sm:$0xff]  ;;  %v368_v44 = vld [vmem:[%s1771_s0 + $0x58] sm:$0xff] }
  0x3c   : > { %483 = vmatpush1.msra.mxu0 %v377_v27  ;;  %644 = vmatpush1.msra.mxu1 %v379_v28  ;;  %v369_v45 = vld [vmem:[%s1771_s0 + $0x60] sm:$0xff]  ;;  %v370_v46 = vld [vmem:[%s1771_s0 + $0x68] sm:$0xff]  ;;  %v371_v47 = vld [vmem:[%s1771_s0 + $0x70] sm:$0xff]  ;;  %p1309_p12 = pnand %p1308_p8, %p1464_p9  ;;  %p1316_p5 = por %p1315_p3, %p1314_p2 }
  0x3d   : > { %484 = vmatprep.subr.mxu0 %v374_v29  ;;  %645 = vmatprep.subr.mxu1 %v376_v30  ;;  %v372_v48 = vld [vmem:[%s1771_s0 + $0x78] sm:$0xff] }
  0x3e   : > { %485 = vmatpush1.msra.mxu0 %v373_v31  ;;  %646 = vmatpush1.msra.mxu1 %v375_v32  ;;  %p1310_p0 = pneg %p1309_p12 }
  0x3f   : > { %1171 = vmatmul.mubr.msk.f32.vlgmr.msra.gmra.mxu0 %vm405_vm0, %v357_v33  ;;  %1187 = vmatmul.mubr.msk.f32.vlgmr.msra.gmra.mxu1 %vm405_vm0, %v357_v33 }
  0x40   : > { %524 = vmatprep.mubr.f32.mxu0 %v1393_v0  ;;  %685 = vmatprep.mubr.f32.mxu1 %v1393_v0  ;;  %p1317_p6 = pnand %p1316_p5, %p1310_p0 }
  0x43   : > { %1172 = vmatmul.mubr.msk.f32.gmra.mxu0 %vm405_vm0, %v358_v34  ;;  %1188 = vmatmul.mubr.msk.f32.gmra.mxu1 %vm405_vm0, %v358_v34 }
  0x44   : > { %530 = vmatprep.mubr.f32.mxu0 %v1393_v0  ;;  %691 = vmatprep.mubr.f32.mxu1 %v1393_v0 }
  0x47   : > { %1173 = vmatmul.mubr.msk.f32.gmra.mxu0 %vm405_vm0, %v359_v35  ;;  %1189 = vmatmul.mubr.msk.f32.gmra.mxu1 %vm405_vm0, %v359_v35 }
  0x48   : > { %536 = vmatprep.mubr.f32.mxu0 %v1393_v0  ;;  %697 = vmatprep.mubr.f32.mxu1 %v1393_v0 }
  0x4b   : > { %1174 = vmatmul.mubr.msk.f32.gmra.mxu0 %vm405_vm0, %v360_v36  ;;  %1190 = vmatmul.mubr.msk.f32.gmra.mxu1 %vm405_vm0, %v360_v36 }
  0x4c   : > { %542 = vmatprep.mubr.f32.mxu0 %v1393_v0  ;;  %703 = vmatprep.mubr.f32.mxu1 %v1393_v0 }
  0x4f   : > { %1175 = vmatmul.mubr.msk.f32.gmra.mxu0 %vm405_vm0, %v361_v37  ;;  %1191 = vmatmul.mubr.msk.f32.gmra.mxu1 %vm405_vm0, %v361_v37 }
  0x50   : > { %548 = vmatprep.mubr.f32.mxu0 %v1393_v0  ;;  %709 = vmatprep.mubr.f32.mxu1 %v1393_v0 }
  0x53   : > { %1176 = vmatmul.mubr.msk.f32.gmra.mxu0 %vm405_vm0, %v362_v38  ;;  %1192 = vmatmul.mubr.msk.f32.gmra.mxu1 %vm405_vm0, %v362_v38 }
  0x54   : > { %554 = vmatprep.mubr.f32.mxu0 %v1393_v0  ;;  %715 = vmatprep.mubr.f32.mxu1 %v1393_v0 }
  0x57   : > { %1177 = vmatmul.mubr.msk.f32.gmra.mxu0 %vm405_vm0, %v363_v39  ;;  %1193 = vmatmul.mubr.msk.f32.gmra.mxu1 %vm405_vm0, %v363_v39 }
  0x58   : > { %560 = vmatprep.mubr.f32.mxu0 %v1393_v0  ;;  %721 = vmatprep.mubr.f32.mxu1 %v1393_v0 }
  0x5b   : > { %1178 = vmatmul.mubr.msk.f32.gmra.mxu0 %vm405_vm0, %v364_v40  ;;  %1194 = vmatmul.mubr.msk.f32.gmra.mxu1 %vm405_vm0, %v364_v40 }
  0x5c   : > { %566 = vmatprep.mubr.f32.mxu0 %v1393_v0  ;;  %727 = vmatprep.mubr.f32.mxu1 %v1393_v0 }
  0x5f   : > { %1179 = vmatmul.mubr.msk.f32.gmra.mxu0 %vm405_vm0, %v365_v41  ;;  %1195 = vmatmul.mubr.msk.f32.gmra.mxu1 %vm405_vm0, %v365_v41 }
  0x60   : > { %572 = vmatprep.mubr.f32.mxu0 %v1393_v0  ;;  %733 = vmatprep.mubr.f32.mxu1 %v1393_v0 }
  0x63   : > { %1180 = vmatmul.mubr.msk.f32.gmra.mxu0 %vm405_vm0, %v366_v42  ;;  %1196 = vmatmul.mubr.msk.f32.gmra.mxu1 %vm405_vm0, %v366_v42 }
  0x64   : > { %578 = vmatprep.mubr.f32.mxu0 %v1393_v0  ;;  %739 = vmatprep.mubr.f32.mxu1 %v1393_v0 }
  0x67   : > { %1181 = vmatmul.mubr.msk.f32.gmra.mxu0 %vm405_vm0, %v367_v43  ;;  %1197 = vmatmul.mubr.msk.f32.gmra.mxu1 %vm405_vm0, %v367_v43 }
  0x68   : > { %584 = vmatprep.mubr.f32.mxu0 %v1393_v0  ;;  %745 = vmatprep.mubr.f32.mxu1 %v1393_v0 }
  0x6b   : > { %1182 = vmatmul.mubr.msk.f32.gmra.mxu0 %vm405_vm0, %v368_v44  ;;  %1198 = vmatmul.mubr.msk.f32.gmra.mxu1 %vm405_vm0, %v368_v44 }
  0x6c   : > { %590 = vmatprep.mubr.f32.mxu0 %v1393_v0  ;;  %751 = vmatprep.mubr.f32.mxu1 %v1393_v0 }
  0x6f   : > { %1183 = vmatmul.mubr.msk.f32.gmra.mxu0 %vm405_vm0, %v369_v45  ;;  %1199 = vmatmul.mubr.msk.f32.gmra.mxu1 %vm405_vm0, %v369_v45 }
  0x70   : > { %596 = vmatprep.mubr.f32.mxu0 %v1393_v0  ;;  %757 = vmatprep.mubr.f32.mxu1 %v1393_v0 }
  0x73   : > { %1184 = vmatmul.mubr.msk.f32.gmra.mxu0 %vm405_vm0, %v370_v46  ;;  %1200 = vmatmul.mubr.msk.f32.gmra.mxu1 %vm405_vm0, %v370_v46 }
  0x74   : > { %602 = vmatprep.mubr.f32.mxu0 %v1393_v0  ;;  %763 = vmatprep.mubr.f32.mxu1 %v1393_v0 }
  0x77   : > { %1185 = vmatmul.mubr.msk.f32.gmra.mxu0 %vm405_vm0, %v371_v47  ;;  %1201 = vmatmul.mubr.msk.f32.gmra.mxu1 %vm405_vm0, %v371_v47 }
  0x78   : > { %608 = vmatprep.mubr.f32.mxu0 %v1393_v0  ;;  %769 = vmatprep.mubr.f32.mxu1 %v1393_v0 }
  0x7b   : > { %1186 = vmatmul.mubr.msk.f32.gmra.mxu0 %vm405_vm0, %v372_v48  ;;  %1202 = vmatmul.mubr.msk.f32.gmra.mxu1 %vm405_vm0, %v372_v48 }
  0xff   : > { %v520_v49 = vpop.f32.mrf.mxu0  ;;  %v681_v50 = vpop.f32.mrf.mxu1 }
 0x100   : > { %971 = vst [vmem:[%s1650_s28] sm:$0xff] %v520_v49  ;;  %973 = vst [vmem:[%s1650_s28 + $0x10] sm:$0xff] %v681_v50 }
 0x101   : > { %v522_v51 = vpop.f32.mrf.mxu0  ;;  %v683_v52 = vpop.f32.mrf.mxu1 }
 0x102   : > { %972 = vst [vmem:[%s1650_s28 + $0x8] sm:$0xff] %v522_v51  ;;  %974 = vst [vmem:[%s1650_s28 + $0x18] sm:$0xff] %v683_v52 }
 0x103   : > { %v526_v53 = vpop.f32.mrf.mxu0  ;;  %v687_v54 = vpop.f32.mrf.mxu1 }
 0x104   : > { %975 = vst [vmem:[%s1650_s28 + $0x20] sm:$0xff] %v526_v53  ;;  %977 = vst [vmem:[%s1650_s28 + $0x30] sm:$0xff] %v687_v54 }
 0x105   : > { %v528_v55 = vpop.f32.mrf.mxu0  ;;  %v689_v56 = vpop.f32.mrf.mxu1 }
 0x106   : > { %976 = vst [vmem:[%s1650_s28 + $0x28] sm:$0xff] %v528_v55  ;;  %978 = vst [vmem:[%s1650_s28 + $0x38] sm:$0xff] %v689_v56 }
 0x107   : > { %v532_v57 = vpop.f32.mrf.mxu0  ;;  %v693_v58 = vpop.f32.mrf.mxu1 }
 0x108   : > { %979 = vst [vmem:[%s1650_s28 + $0x40] sm:$0xff] %v532_v57  ;;  %981 = vst [vmem:[%s1650_s28 + $0x50] sm:$0xff] %v693_v58 }
 0x109   : > { %v534_v59 = vpop.f32.mrf.mxu0  ;;  %v695_v60 = vpop.f32.mrf.mxu1 }
 0x10a   : > { %980 = vst [vmem:[%s1650_s28 + $0x48] sm:$0xff] %v534_v59  ;;  %982 = vst [vmem:[%s1650_s28 + $0x58] sm:$0xff] %v695_v60 }
 0x10b   : > { %v538_v61 = vpop.f32.mrf.mxu0  ;;  %v699_v62 = vpop.f32.mrf.mxu1 }
 0x10c   : > { %983 = vst [vmem:[%s1650_s28 + $0x60] sm:$0xff] %v538_v61  ;;  %985 = vst [vmem:[%s1650_s28 + $0x70] sm:$0xff] %v699_v62 }
 0x10d   : > { %v540_v63 = vpop.f32.mrf.mxu0  ;;  %v701_v0 = vpop.f32.mrf.mxu1 }
 0x10e   : > { %984 = vst [vmem:[%s1650_s28 + $0x68] sm:$0xff] %v540_v63  ;;  %986 = vst [vmem:[%s1650_s28 + $0x78] sm:$0xff] %v701_v0 }
 0x10f   : > { %v544_v1 = vpop.f32.mrf.mxu0  ;;  %v705_v2 = vpop.f32.mrf.mxu1 }
 0x110   : > { %987 = vst [vmem:[%s1650_s28 + $0x80] sm:$0xff] %v544_v1  ;;  %989 = vst [vmem:[%s1650_s28 + $0x90] sm:$0xff] %v705_v2 }
 0x111   : > { %v546_v3 = vpop.f32.mrf.mxu0  ;;  %v707_v4 = vpop.f32.mrf.mxu1 }
 0x112   : > { %988 = vst [vmem:[%s1650_s28 + $0x88] sm:$0xff] %v546_v3  ;;  %990 = vst [vmem:[%s1650_s28 + $0x98] sm:$0xff] %v707_v4 }
 0x113   : > { %v550_v5 = vpop.f32.mrf.mxu0  ;;  %v711_v6 = vpop.f32.mrf.mxu1 }
 0x114   : > { %991 = vst [vmem:[%s1650_s28 + $0xa0] sm:$0xff] %v550_v5  ;;  %993 = vst [vmem:[%s1650_s28 + $0xb0] sm:$0xff] %v711_v6 }
 0x115   : > { %v552_v7 = vpop.f32.mrf.mxu0  ;;  %v713_v8 = vpop.f32.mrf.mxu1 }
 0x116   : > { %992 = vst [vmem:[%s1650_s28 + $0xa8] sm:$0xff] %v552_v7  ;;  %994 = vst [vmem:[%s1650_s28 + $0xb8] sm:$0xff] %v713_v8 }
 0x117   : > { %v556_v9 = vpop.f32.mrf.mxu0  ;;  %v717_v10 = vpop.f32.mrf.mxu1 }
 0x118   : > { %995 = vst [vmem:[%s1650_s28 + $0xc0] sm:$0xff] %v556_v9  ;;  %997 = vst [vmem:[%s1650_s28 + $0xd0] sm:$0xff] %v717_v10 }
 0x119   : > { %v558_v11 = vpop.f32.mrf.mxu0  ;;  %v719_v12 = vpop.f32.mrf.mxu1 }
 0x11a   : > { %996 = vst [vmem:[%s1650_s28 + $0xc8] sm:$0xff] %v558_v11  ;;  %998 = vst [vmem:[%s1650_s28 + $0xd8] sm:$0xff] %v719_v12 }
 0x11b   : > { %v562_v13 = vpop.f32.mrf.mxu0  ;;  %v723_v14 = vpop.f32.mrf.mxu1 }
 0x11c   : > { %999 = vst [vmem:[%s1650_s28 + $0xe0] sm:$0xff] %v562_v13  ;;  %1001 = vst [vmem:[%s1650_s28 + $0xf0] sm:$0xff] %v723_v14 }
 0x11d   : > { %v564_v15 = vpop.f32.mrf.mxu0  ;;  %v725_v16 = vpop.f32.mrf.mxu1 }
 0x11e   : > { %1000 = vst [vmem:[%s1650_s28 + $0xe8] sm:$0xff] %v564_v15  ;;  %1002 = vst [vmem:[%s1650_s28 + $0xf8] sm:$0xff] %v725_v16 }
 0x11f   : > { %v568_v17 = vpop.f32.mrf.mxu0  ;;  %v729_v18 = vpop.f32.mrf.mxu1 }
 0x120   : > { %1003 = vst [vmem:[%s1650_s28 + $0x100] sm:$0xff] %v568_v17  ;;  %1005 = vst [vmem:[%s1650_s28 + $0x110] sm:$0xff] %v729_v18 }
 0x121   : > { %v570_v19 = vpop.f32.mrf.mxu0  ;;  %v731_v20 = vpop.f32.mrf.mxu1 }
 0x122   : > { %1004 = vst [vmem:[%s1650_s28 + $0x108] sm:$0xff] %v570_v19  ;;  %1006 = vst [vmem:[%s1650_s28 + $0x118] sm:$0xff] %v731_v20 }
 0x123   : > { %v574_v21 = vpop.f32.mrf.mxu0  ;;  %v735_v22 = vpop.f32.mrf.mxu1 }
 0x124   : > { %1007 = vst [vmem:[%s1650_s28 + $0x120] sm:$0xff] %v574_v21  ;;  %1009 = vst [vmem:[%s1650_s28 + $0x130] sm:$0xff] %v735_v22 }
 0x125   : > { %v576_v23 = vpop.f32.mrf.mxu0  ;;  %v737_v24 = vpop.f32.mrf.mxu1 }
 0x126   : > { %1008 = vst [vmem:[%s1650_s28 + $0x128] sm:$0xff] %v576_v23  ;;  %1010 = vst [vmem:[%s1650_s28 + $0x138] sm:$0xff] %v737_v24 }
 0x127   : > { %v580_v25 = vpop.f32.mrf.mxu0  ;;  %v741_v26 = vpop.f32.mrf.mxu1 }
 0x128   : > { %1011 = vst [vmem:[%s1650_s28 + $0x140] sm:$0xff] %v580_v25  ;;  %1013 = vst [vmem:[%s1650_s28 + $0x150] sm:$0xff] %v741_v26 }
 0x129   : > { %v582_v27 = vpop.f32.mrf.mxu0  ;;  %v743_v28 = vpop.f32.mrf.mxu1 }
 0x12a   : > { %1012 = vst [vmem:[%s1650_s28 + $0x148] sm:$0xff] %v582_v27  ;;  %1014 = vst [vmem:[%s1650_s28 + $0x158] sm:$0xff] %v743_v28 }
 0x12b   : > { %v586_v29 = vpop.f32.mrf.mxu0  ;;  %v747_v30 = vpop.f32.mrf.mxu1 }
 0x12c   : > { %1015 = vst [vmem:[%s1650_s28 + $0x160] sm:$0xff] %v586_v29  ;;  %1017 = vst [vmem:[%s1650_s28 + $0x170] sm:$0xff] %v747_v30 }
 0x12d   : > { %v588_v31 = vpop.f32.mrf.mxu0  ;;  %v749_v32 = vpop.f32.mrf.mxu1 }
 0x12e   : > { %1016 = vst [vmem:[%s1650_s28 + $0x168] sm:$0xff] %v588_v31  ;;  %1018 = vst [vmem:[%s1650_s28 + $0x178] sm:$0xff] %v749_v32 }
 0x12f   : > { %v592_v33 = vpop.f32.mrf.mxu0  ;;  %v753_v34 = vpop.f32.mrf.mxu1 }
 0x130   : > { %1019 = vst [vmem:[%s1650_s28 + $0x180] sm:$0xff] %v592_v33  ;;  %1021 = vst [vmem:[%s1650_s28 + $0x190] sm:$0xff] %v753_v34 }
 0x131   : > { %v594_v35 = vpop.f32.mrf.mxu0  ;;  %v755_v36 = vpop.f32.mrf.mxu1 }
 0x132   : > { %1020 = vst [vmem:[%s1650_s28 + $0x188] sm:$0xff] %v594_v35  ;;  %1022 = vst [vmem:[%s1650_s28 + $0x198] sm:$0xff] %v755_v36 }
 0x133   : > { %v598_v37 = vpop.f32.mrf.mxu0  ;;  %v759_v38 = vpop.f32.mrf.mxu1 }
 0x134   : > { %1023 = vst [vmem:[%s1650_s28 + $0x1a0] sm:$0xff] %v598_v37  ;;  %1025 = vst [vmem:[%s1650_s28 + $0x1b0] sm:$0xff] %v759_v38 }
 0x135   : > { %v600_v39 = vpop.f32.mrf.mxu0  ;;  %v761_v40 = vpop.f32.mrf.mxu1 }
 0x136   : > { %1024 = vst [vmem:[%s1650_s28 + $0x1a8] sm:$0xff] %v600_v39  ;;  %1026 = vst [vmem:[%s1650_s28 + $0x1b8] sm:$0xff] %v761_v40 }
 0x137   : > { %v604_v41 = vpop.f32.mrf.mxu0  ;;  %v765_v42 = vpop.f32.mrf.mxu1 }
 0x138   : > { %1027 = vst [vmem:[%s1650_s28 + $0x1c0] sm:$0xff] %v604_v41  ;;  %1029 = vst [vmem:[%s1650_s28 + $0x1d0] sm:$0xff] %v765_v42 }
 0x139   : > { %v606_v43 = vpop.f32.mrf.mxu0  ;;  %v767_v44 = vpop.f32.mrf.mxu1 }
 0x13a   : > { %1028 = vst [vmem:[%s1650_s28 + $0x1c8] sm:$0xff] %v606_v43  ;;  %1030 = vst [vmem:[%s1650_s28 + $0x1d8] sm:$0xff] %v767_v44 }
 0x13b   : > { %v610_v45 = vpop.f32.mrf.mxu0  ;;  %v771_v46 = vpop.f32.mrf.mxu1 }
 0x13c   : > { %1031 = vst [vmem:[%s1650_s28 + $0x1e0] sm:$0xff] %v610_v45  ;;  %1033 = vst [vmem:[%s1650_s28 + $0x1f0] sm:$0xff] %v771_v46 }
 0x13d   : > { %v612_v47 = vpop.f32.mrf.mxu0  ;;  %v773_v48 = vpop.f32.mrf.mxu1 }
 0x13e   : > { %1032 = vst [vmem:[%s1650_s28 + $0x1e8] sm:$0xff] %v612_v47  ;;  %1034 = vst [vmem:[%s1650_s28 + $0x1f8] sm:$0xff] %v773_v48 }
 0x13f   : > { %1320 = shalt.err (!%p1317_p6)
}
 0x140   : > { %s1321_s15 = scalar_lea.hbm %s1717_s4, 8192  ;;  %s1325_s19 = scalar_lea.hbm %s1773_s2, 16384 }
 0x141   : > { %p1322_p7 = scmp.ne.s32.totalorder %s1717_s4, %s1321_s15  ;;  %p1326_p13 = scmp.lt.s32.totalorder %s1717_s4, %s1773_s2 }
 0x142   : > { %p1327_p1 = scmp.lt.s32.totalorder %s1325_s19, %s1321_s15 }
 0x143   : > { %p1323_p10 = pnand %p1322_p7, %p1464_p9 }
 0x144   : > { %p1328_p8 = por %p1327_p1, %p1326_p13 }
 0x145   : > { %p1324_p4 = pneg %p1323_p10 }
 0x147   : > { %p1329_p12 = pnand %p1328_p8, %p1324_p4 }
 0x149   : > { %1332 = shalt.err (!%p1329_p12)
}
 0x14a   : > { %s1395_s27 = smov 512   ;;  %s1396_s28 = smov 1024  }
 0x14b   : > { %s1397_s21 = smov 32  }
 0x14c   : > { %1212 = dma.vmem_to_hbm [thread:$0]  (%p1464_p9), %s1719_s29, 8192, %s1717_s4, %s1036_s12, %s1395_s27, %s1396_s28, %s1397_s21  }
 0x14d PF: > { %s1067_s30 = sand.u32 1, %s1367_s9   ;;  %p1779_p0 = scmp.ge.s32.totalorder %s1387_s14, 2 }
 0x14e   : > { %s1068_s3 = scalar_lea.sflag [#allocation5], %s1067_s30 }
 0x14f   : > { %p1219_p2 = pnand %p1779_p0, %p1471_p11 }
 0x151   : > { %p1220_p3 = pneg %p1219_p2 }
 0x153   : > { %1362 = dma.done.wait (%p1220_p3), %s1068_s3, 8192  }
 0x154   : > { %1364 = vsyncadd (%p1220_p3), %s1068_s3, 4294959104  ;;  %s18_s14 = sadd.s32 1, %s1387_s14   ;;  %s1780_s9 = smov %s1371_s10 }
 0x155   : > { %p15_p5 = scmp.ge.s32.totalorder %s18_s14, 4   ;;  %s1781_s10 = smov %s1375_s11 }
 0x156   : > { %s1782_s11 = smov %s1469_s23  ;;  %s1783_s12 = smov %s1383_s13 }
 0x157   : > { %s1784_s13 = smov %s1786_s17  ;;  %17 = sbr.rel (!%p15_p5) target bundleno = 6 (0x6), region = 84 }
 0x15c   :  { %1073 = vsyncpa [#allocation4], 1 }
 0x15d   :  { %1075 = vsyncpa [#allocation4 + $0x1], 1 }
 0x15e   :  { %1076 = vsyncpa [#allocation5], 1 }
 0x15f   :  { %1078 = vsyncpa [#allocation5 + $0x1], 1 }

</bundles_post_ra>
